<compile_context>
chip_gen: v7x
topology: tpu7x:2x2x1
jax: 0.10.0
libtpu: 0.0.40
codegen_flags: <defaults>
</compile_context>

<pallas_src>
import jax
import jax.numpy as jnp
from jax.experimental import pallas as pl
from jax.experimental.pallas import tpu as pltpu

LANES = 128


def _linear_softmax_kernel(x_ref, w_ref, b_ref, o_ref, acc_ref):
    k = pl.program_id(0)

    @pl.when(k == 0)
    def _():
        acc_ref[...] = jnp.zeros_like(acc_ref)

    # Hot path: VPU multiply against the lane-dense weight tile, sublane
    # reduce to a (B, 128) partial accumulator.  No MXU (B=2, N=1 would run
    # at ~0% utilization and force a lane-sparse RHS).
    # x_ref: (B, rows_per_step, 128), w_ref: (rows_per_step, 128).
    acc_ref[...] += jnp.sum(x_ref[...] * w_ref[...], axis=1)

    @pl.when(k == pl.num_programs(0) - 1)
    def _():
        # One lane (XLU) reduce at the end, bias add, softmax over dim=0
        # (the batch axis), exactly like nn.Softmax(dim=0).
        y = jnp.sum(acc_ref[...], axis=1, keepdims=True) + b_ref[0]   # (B, 1)
        m = jnp.max(y, axis=0, keepdims=True)
        e = jnp.exp(y - m)
        s = jnp.sum(e, axis=0, keepdims=True)
        o_ref[...] = (e / s).astype(o_ref.dtype)


def cnn_forward(x_nchw, w, b, *, rows_per_step=392):
    """x_nchw: (B, 3, 224, 224) f32.  w: (K, 1) f32.  b: (1, 1) f32.  -> (B, 1)."""
    B = x_nchw.shape[0]
    K = x_nchw.shape[1] * x_nchw.shape[2] * x_nchw.shape[3]
    assert K % LANES == 0, "K must be a multiple of 128 for the lane-dense layout"
    rows = K // LANES                                   # 1176 for 3*224*224
    assert rows % rows_per_step == 0, "rows must be divisible by rows_per_step"
    assert rows_per_step % 8 == 0 or rows_per_step == rows, "(8,128) tiling"

    # Glue (torch .view equivalent) + lane-dense layouts.  Element order is
    # preserved, so sum_k x_flat[b,k]*w[k,0] == sum_{r,c} x3d[b,r,c]*w2d[r,c].
    x3d = x_nchw.reshape(B, rows, LANES)
    w2d = w.reshape(rows, LANES)
    b1d = b.reshape(1)

    grid = (rows // rows_per_step,)
    return pl.pallas_call(
        _linear_softmax_kernel,
        out_shape=jax.ShapeDtypeStruct((B, 1), jnp.float32),
        grid_spec=pltpu.PrefetchScalarGridSpec(
            num_scalar_prefetch=0,
            grid=grid,
            in_specs=[
                # x tile: (B, rows_per_step, 128) -- sublane/lane dense.
                pl.BlockSpec((B, rows_per_step, LANES), lambda k: (0, k, 0)),
                # w tile: (rows_per_step, 128) -- lane dense.
                pl.BlockSpec((rows_per_step, LANES), lambda k: (k, 0)),
                # bias: tiny, resident in SMEM, read only at finalize.
                pl.BlockSpec(memory_space=pltpu.SMEM),
            ],
            out_specs=pl.BlockSpec((B, 1), lambda k: (0, 0)),
            scratch_shapes=[pltpu.VMEM((B, LANES), jnp.float32)],
        ),
        compiler_params=pltpu.CompilerParams(
            dimension_semantics=("arbitrary",),         # K is a reduction axis
        ),
    )(x3d, w2d, b1d)


if __name__ == "__main__":
    B, C, H, W = 2, 3, 224, 224
    K = C * H * W                                       # 150528 = fc1 in_features

    key = jax.random.PRNGKey(0)
    kx, kw, kb = jax.random.split(key, 3)

    # Deterministic parameter init (same shapes as nn.Linear(150528, 1)).
    bound = 1.0 / jnp.sqrt(jnp.float32(K))
    w = jax.random.uniform(kw, (K, 1), jnp.float32, -bound, bound)
    b = jax.random.uniform(kb, (1, 1), jnp.float32, -bound, bound)

    x = jax.random.normal(kx, (B, C, H, W), jnp.float32)

    out = cnn_forward(x, w, b)
    out = jax.block_until_ready(out)

    # Reference check in plain JAX.
    y_ref = x.reshape(B, K) @ w + b
    ref = jax.nn.softmax(y_ref, axis=0)
    assert out.shape == (B, 1)
    assert jnp.allclose(out, ref, rtol=1e-5, atol=2e-5)

    print("KERNEL_OK")
</pallas_src>

<mosaic_0001>
module attributes {stable_mosaic.version = 11 : i64} {
  func.func @_linear_softmax_kernel(%arg0: i32, %arg1: memref<2x392x128xf32, #tpu.memory_space<vmem>>, %arg2: memref<392x128xf32, #tpu.memory_space<vmem>>, %arg3: memref<1xf32, #tpu.memory_space<smem>>, %arg4: memref<2x1xf32, #tpu.memory_space<vmem>>, %arg5: memref<2x128xf32, #tpu.memory_space<vmem>>) attributes {dimension_semantics = [#tpu.dimension_semantics<arbitrary>], iteration_bounds = array<i64: 3>, scalar_prefetch = 0 : i64, scratch_operands = 1 : i64, tpu.core_type = #tpu.core_type<tc>, window_params = [{transform_indices = @transform_0, window_bounds = array<i64: 2, 392, 128>}, {transform_indices = @transform_1, window_bounds = array<i64: 392, 128>}, {transform_indices = @transform_2, window_bounds = array<i64: 1>}, {pipeline_mode = #tpu.pipeline_mode<synchronous>, transform_indices = @transform_3, window_bounds = array<i64: 2, 1>}]} {
    %c0_i32 = arith.constant 0 : i32
    %0 = arith.cmpi eq, %arg0, %c0_i32 : i32
    %1 = arith.extui %0 : i1 to i32
    %c0_i32_0 = arith.constant 0 : i32
    %2 = arith.cmpi ne, %1, %c0_i32_0 : i32
    scf.if %2 {
      %cst_10 = arith.constant 0.000000e+00 : f32
      %15 = vector.broadcast %cst_10 : f32 to vector<2x128xf32>
      %c0_11 = arith.constant 0 : index
      %c0_12 = arith.constant 0 : index
      %16 = vector.load %arg5[%c0_11, %c0_12] : memref<2x128xf32, #tpu.memory_space<vmem>>, vector<2x128xf32>
      tpu.vector_store %arg5[%c0_11, %c0_12], %15 {strides = array<i32>} : memref<2x128xf32, #tpu.memory_space<vmem>>, vector<2x128xf32>,
    } else {
    }
    %c0 = arith.constant 0 : index
    %c0_1 = arith.constant 0 : index
    %3 = vector.load %arg5[%c0, %c0_1] : memref<2x128xf32, #tpu.memory_space<vmem>>, vector<2x128xf32>
    %c0_2 = arith.constant 0 : index
    %c0_3 = arith.constant 0 : index
    %c0_4 = arith.constant 0 : index
    %4 = vector.load %arg1[%c0_2, %c0_3, %c0_4] : memref<2x392x128xf32, #tpu.memory_space<vmem>>, vector<2x392x128xf32>
    %c0_5 = arith.constant 0 : index
    %c0_6 = arith.constant 0 : index
    %5 = vector.load %arg2[%c0_5, %c0_6] : memref<392x128xf32, #tpu.memory_space<vmem>>, vector<392x128xf32>
    %6 = vector.shape_cast %5 : vector<392x128xf32> to vector<1x392x128xf32>
    %7 = vector.broadcast %6 : vector<1x392x128xf32> to vector<2x392x128xf32>
    %8 = arith.mulf %4, %7 : vector<2x392x128xf32>
    %cst = arith.constant dense<0.000000e+00> : vector<2x128xf32>
    %9 = vector.multi_reduction <add>, %8, %cst [1] : vector<2x392x128xf32> to vector<2x128xf32>
    %10 = arith.addf %3, %9 : vector<2x128xf32>
    %c0_7 = arith.constant 0 : index
    %c0_8 = arith.constant 0 : index
    %11 = vector.load %arg5[%c0_7, %c0_8] : memref<2x128xf32, #tpu.memory_space<vmem>>, vector<2x128xf32>
    tpu.vector_store %arg5[%c0_7, %c0_8], %10 {strides = array<i32>} : memref<2x128xf32, #tpu.memory_space<vmem>>, vector<2x128xf32>,
    %c2_i32 = arith.constant 2 : i32
    %12 = arith.cmpi eq, %arg0, %c2_i32 : i32
    %13 = arith.extui %12 : i1 to i32
    %c0_i32_9 = arith.constant 0 : i32
    %14 = arith.cmpi ne, %13, %c0_i32_9 : i32
    scf.if %14 {
      %c0_10 = arith.constant 0 : index
      %c0_11 = arith.constant 0 : index
      %15 = vector.load %arg5[%c0_10, %c0_11] : memref<2x128xf32, #tpu.memory_space<vmem>>, vector<2x128xf32>
      %cst_12 = arith.constant dense<0.000000e+00> : vector<2xf32>
      %16 = vector.multi_reduction <add>, %15, %cst_12 [1] : vector<2x128xf32> to vector<2xf32>
      %17 = vector.shape_cast %16 : vector<2xf32> to vector<2x1xf32>
      %c0_13 = arith.constant 0 : index
      %18 = memref.load %arg3[%c0_13] : memref<1xf32, #tpu.memory_space<smem>>
      %19 = vector.broadcast %18 : f32 to vector<2x1xf32>
      %20 = arith.addf %17, %19 : vector<2x1xf32>
      %cst_14 = arith.constant dense<0xFF800000> : vector<1xf32>
      %21 = vector.multi_reduction <maximumf>, %20, %cst_14 [0] : vector<2x1xf32> to vector<1xf32>
      %22 = vector.shape_cast %21 : vector<1xf32> to vector<1x1xf32>
      %23 = vector.broadcast %22 : vector<1x1xf32> to vector<2x1xf32>
      %24 = arith.subf %20, %23 : vector<2x1xf32>
      %25 = math.exp %24 : vector<2x1xf32>
      %cst_15 = arith.constant dense<0.000000e+00> : vector<1xf32>
      %26 = vector.multi_reduction <add>, %25, %cst_15 [0] : vector<2x1xf32> to vector<1xf32>
      %27 = vector.shape_cast %26 : vector<1xf32> to vector<1x1xf32>
      %28 = vector.broadcast %27 : vector<1x1xf32> to vector<2x1xf32>
      %29 = arith.divf %25, %28 : vector<2x1xf32>
      %c0_16 = arith.constant 0 : index
      %c0_17 = arith.constant 0 : index
      %30 = vector.load %arg4[%c0_16, %c0_17] : memref<2x1xf32, #tpu.memory_space<vmem>>, vector<2x1xf32>
      tpu.vector_store %arg4[%c0_16, %c0_17], %29 {strides = array<i32>} : memref<2x1xf32, #tpu.memory_space<vmem>>, vector<2x1xf32>,
    } else {
    }
    return
  }
  func.func @transform_0(%arg0: i32) -> (i32, i32, i32) {
    %c0_i32 = arith.constant 0 : i32
    %c0_i32_0 = arith.constant 0 : i32
    %c0_i32_1 = arith.constant 0 : i32
    return %c0_i32, %arg0, %c0_i32_0 : i32, i32, i32
  }
  func.func @transform_1(%arg0: i32) -> (i32, i32) {
    %c0_i32 = arith.constant 0 : i32
    %c0_i32_0 = arith.constant 0 : i32
    return %arg0, %c0_i32 : i32, i32
  }
  func.func @transform_2(%arg0: i32) -> i32 {
    %c0_i32 = arith.constant 0 : i32
    %c0_i32_0 = arith.constant 0 : i32
    return %c0_i32 : i32
  }
  func.func @transform_3(%arg0: i32) -> (i32, i32) {
    %c0_i32 = arith.constant 0 : i32
    %c0_i32_0 = arith.constant 0 : i32
    %c0_i32_1 = arith.constant 0 : i32
    return %c0_i32, %c0_i32_0 : i32, i32
  }
}

</mosaic_0001>

<bundles_post_ra>
// kernel: tpu_custom_call.1
= control target key start
LH: loop header
LB: loop body
LE: loop exit
PB: predicated region body
PF: predicated region fallthrough
CT: control target
= control target key end

     0   :  { %s1164_s0 = inlined_call_operand.hbm [shape: f32[2,1176,128], index: 0, kind: input, shape index: {}]   ;;  %s1165_s1 = inlined_call_operand.hbm [shape: f32[1176,128], index: 1, kind: input, shape index: {}]   ;;  %s1166_s2 = inlined_call_operand.<no memory space> [shape: f32[1], index: 2, kind: input, shape index: {}]   ;;  %s1167_s3 = inlined_call_operand.vmem [shape: f32[2,1], index: 3, kind: output, shape index: {}]  }
   0x1   :  { %8 = sst [smem:[#allocation3]] %s1166_s2 }
   0x2   :  { %9 = vsyncpa [#allocation5], 0 }
   0x3   :  { %11 = vsyncpa [#allocation5 + $0x1], 0 }
   0x4   :  { %12 = vsyncpa [#allocation7], 0 }
   0x5   :  { %14 = vsyncpa [#allocation7 + $0x1], 0  ;;  %s880_s14 = smov 0   ;;  %s882_s15 = smov 0  }
   0x6   :  { %s884_s16 = smov 0   ;;  %s886_s17 = smov 0  }
   0x7 LB: > { %s899_s2 = sadd.s32 4294967295, %s845_s17   ;;  %s902_s18 = sadd.s32 1, %s845_s17   ;;  %s845_s17 = sphi %s886_s17, %s1173_s17   ;;  %s841_s16 = sphi %s884_s16, %s1172_s16   ;;  %s837_s15 = sphi %s882_s15, %s1171_s15   ;;  %s833_s14 = sphi %s880_s14, %s1170_s14  }
   0x8   : > { %s24_s19 = ssub.s32 %s845_s17, %s902_s18  ;;  %s27_s20 = sadd.s32 1, %s841_s16 }
   0x9   : > { %p25_p0 = scmp.eq.s32.totalorder %s24_s19, 0  ;;  %p34_p1 = scmp.ne.s32.totalorder %s841_s16, %s837_s15 }
   0xa   : > { %p35_p2 = scmp.eq.s32.totalorder %s845_s17, 0  ;;  %p40_p3 = scmp.ne.s32.totalorder %s837_s15, %s833_s14 }
   0xb   : > { %s912_s21 = scalar_select %p25_p0, %s841_s16, %s27_s20  }
   0xc   : > { %p914_p4 = por %p35_p2, %p34_p1  ;;  %p41_p5 = scmp.eq.s32.totalorder %s899_s2, 0 }
   0xd   : > { %p707_p7 = scmp.ge.s32.totalorder %s845_s17, 3 }
   0xe   : > { %p919_p6 = por %p41_p5, %p40_p3 }
   0xf   : > { %131 = sbr.rel (%p707_p7) target bundleno = 60 (0x3c), region = 20 }
  0x16   : > { %s925_s24 = sand.u32 1, %s841_s16   ;;  %s717_s25 = smul.u32 6272, %s845_s17 }
  0x17   : > { %s719_s26 = smul.u32 784, %s925_s24  ;;  %s847_s27 = smov 18816  }
  0x18   : > { %724 = sst [smem:[#allocation9]] (%p914_p4), %s847_s27  ;;  %s145_s4 = scalar_lea.hbm %s1164_s0, %s717_s25 }
  0x19   : > { %s723_s28 = scalar_select %p914_p4, [#allocation0], [#allocation10] }
  0x1a   : > { %s139_s6 = scalar_lea.vmem [#allocation4], %s719_s26  ;;  %s848_s8 = smov 6272  }
  0x1b   : > { %s150_s5 = sld [smem:[%s723_s28]]   ;;  %s158_s7 = sshll.u32 %s139_s6, 4  ;;  %s159_s7 = int_to_ptr.vmem [resolvable:$true] %s158_s7 }
  0x1c   : > { %725 = sst [smem:[#allocation9 + $0x1]] (%p914_p4), %s848_s8  ;;  %s849_s9 = smov 49  }
  0x1d   : > { %726 = sst [smem:[#allocation9 + $0x2]] (%p914_p4), %s849_s9  ;;  %s850_s10 = smov 128  }
  0x1e   : > { %727 = sst [smem:[#allocation9 + $0x3]] (%p914_p4), %s850_s10  ;;  %s851_s11 = smov 8  }
  0x1f   : > { %728 = sst [smem:[#allocation9 + $0x4]] (%p914_p4), %s850_s10  ;;  %s136_s14 = scalar_lea.sflag [#allocation5], %s925_s24 }
  0x20   : > { %729 = sst [smem:[#allocation9 + $0x5]] (%p914_p4), %s851_s11  ;;  %s852_s19 = smov [#allocation8]  }
  0x21   : > { %s709_s12 = sshll.u32 %s150_s5, 26  ;;  %s720_s20 = smul.u32 392, %s925_s24 }
  0x22   : > { %s710_s13 = sadd.s32 134217728, %s709_s12  ;;  %s953_s28 = scalar_lea.hbm %s1165_s1, %s717_s25 }
  0x23   : > { %730 = dma.general (%p914_p4), %s145_s4, 12544, %s159_s7, %s136_s14, %s852_s19, [#allocation9], %s710_s13, 0  }
  0x24   : > { %s185_s29 = scalar_lea.vmem [#allocation6], %s720_s20  ;;  %s182_s5 = scalar_lea.sflag [#allocation7], %s925_s24 }
  0x25   : > { %s192_s30 = sshll.u32 %s185_s29, 4  ;;  %s779_s6 = scalar_lea.hbm %s953_s28, 6272  ;;  %s955_s30 = int_to_ptr.vmem [resolvable:$true] %s192_s30 }
  0x26   : > { %p780_p8 = scmp.ne.s32.totalorder %s953_s28, %s779_s6  ;;  %s783_s8 = scalar_lea.hbm %s1165_s1, 18816 }
  0x27   : > { %p784_p11 = scmp.lt.u32.totalorder %s953_s28, %s1165_s1  ;;  %p785_p12 = scmp.lt.u32.totalorder %s783_s8, %s779_s6 }
  0x28   : > { %p781_p9 = pnand %p780_p8, %p914_p4  ;;  %p787_p0 = scmp.lt.u32.totalorder %s779_s6, %s953_s28 }
  0x29   : > { %p786_p13 = por %p785_p12, %p784_p11 }
  0x2a   : > { %p782_p10 = pneg %p781_p9 }
  0x2b   : > { %p788_p1 = por %p787_p0, %p786_p13 }
  0x2d   : > { %p789_p2 = pnand %p788_p1, %p782_p10 }
  0x2f   : > { %792 = shalt.err (!%p789_p2)
}
  0x30   : > { %s793_s10 = scalar_lea.vmem %s955_s30, 6272  ;;  %s853_s11 = smov [#allocation6]  }
  0x31   : > { %p794_p3 = scmp.ne.s32.totalorder %s955_s30, %s793_s10  ;;  %s797_s12 = sshll.u32 %s853_s11, 4  ;;  %s798_s12 = int_to_ptr.vmem [resolvable:$false] %s797_s12 }
  0x32   : > { %s799_s13 = scalar_lea.vmem %s798_s12, 12544  ;;  %p800_p8 = scmp.lt.s32.totalorder %s955_s30, %s798_s12 }
  0x33   : > { %p795_p5 = pnand %p794_p3, %p914_p4  ;;  %p801_p9 = scmp.lt.s32.totalorder %s799_s13, %s793_s10 }
  0x35   : > { %p796_p7 = pneg %p795_p5  ;;  %p802_p11 = por %p801_p9, %p800_p8 }
  0x37   : > { %p803_p12 = pnand %p802_p11, %p796_p7 }
  0x39   : > { %806 = shalt.err (!%p803_p12)
}
  0x3a   : > { %s854_s14 = smov 128   ;;  %s855_s19 = smov 8  }
  0x3b   : > { %731 = dma.hbm_to_vmem [thread:$0]  (%p914_p4), %s953_s28, 6272, %s955_s30, %s182_s5, %s854_s14, %s854_s14, %s855_s19  }
  0x3c PF: > { %p712_p10 = scmp.ge.s32.totalorder %s845_s17, 1  ;;  %p200_p13 = scmp.lt.s32.totalorder %s845_s17, 4 }
  0x3e   : > { %p201_p0 = pnand %p712_p10, %p200_p13 }
  0x3f   : > { %s206_s20 = sand.u32 (!%p201_p0), 1, %s837_s15  }
  0x40   : > { %204 = sbr.rel (%p201_p0) target bundleno = 409 (0x199), region = 32  ;;  %s207_s27 = scalar_lea.sflag (!%p201_p0), [#allocation5], %s206_s20 }
  0x41   : > { %s721_s26 = smul.u32 (!%p201_p0), 784, %s206_s20 }
  0x43   : > { %s984_s29 = scalar_lea.vmem (!%p201_p0), [#allocation4], %s721_s26 }
  0x47   : > { %824 = dma.done.wait (%p919_p6), %s207_s27, 12544  }
  0x48   : > { %826 = vsyncadd (%p919_p6), %s207_s27, 4294954752  ;;  %s722_s22 = smul.u32 392, %s206_s20  ;;  %s216_s24 = scalar_lea.sflag [#allocation7], %s206_s20 }
  0x4a   : > { %s990_s28 = scalar_lea.vmem [#allocation6], %s722_s22 }
  0x4b   : > { %828 = dma.done.wait (%p919_p6), %s216_s24, 6272  }
  0x4c   : > { %830 = vsyncadd (%p919_p6), %s216_s24, 4294961024  ;;  %p713_p4 = scmp.ne.s32.totalorder %s899_s2, 0 }
  0x4d   : > { %v856_v0 = vmov (!%p713_p4), 0.0  }
  0x4e   : > { %247 = sbr.rel (%p713_p4) target bundleno = 85 (0x55), region = 44  ;;  %248 = vst [vmem:[#allocation2] sm:$0x3] (!%p713_p4), %v856_v0 }
  0x55 PF: > { %v250_v1 = vld [vmem:[%s984_s29] sm:$0xff]  ;;  %v251_v2 = vld [vmem:[%s984_s29 + $0x8] sm:$0xff]  ;;  %v300_v4 = vld [vmem:[%s984_s29 + $0x190] sm:$0xff]  ;;  %vm605_vm0 = vcmask 1041409   ;;  %p714_p6 = scmp.ne.s32.totalorder %s899_s2, 2 }
  0x56   : > { %v299_v3 = vld [vmem:[%s984_s29 + $0x188] sm:$0xff]  ;;  %v348_v5 = vld [vmem:[%s990_s28] sm:$0xff]  ;;  %v252_v7 = vld [vmem:[%s984_s29 + $0x10] sm:$0xff]  ;;  %vm615_vm1 = vcmask (!%p714_p6), 1041408   ;;  %s619_s17 = sld [smem:[#allocation3]] (!%p714_p6)  ;;  %vm641_vm2 = vcmask (!%p714_p6), 1024  }
  0x57   : > { %v349_v6 = vld [vmem:[%s990_s28 + $0x8] sm:$0xff]  ;;  %v301_v8 = vld [vmem:[%s984_s29 + $0x198] sm:$0xff]  ;;  %v350_v9 = vld [vmem:[%s990_s28 + $0x10] sm:$0xff]  ;;  %v397_v10 = vmul.f32 %v348_v5, %v250_v1  ;;  %v446_v12 = vmul.f32 %v348_v5, %v299_v3 }
  0x58   : > { %v398_v11 = vmul.f32 %v349_v6, %v251_v2  ;;  %v447_v13 = vmul.f32 %v349_v6, %v300_v4  ;;  %v253_v14 = vld [vmem:[%s984_s29 + $0x18] sm:$0xff]  ;;  %v302_v15 = vld [vmem:[%s984_s29 + $0x1a0] sm:$0xff]  ;;  %v399_v17 = vmul.f32 %v350_v9, %v252_v7  ;;  %v448_v18 = vmul.f32 %v350_v9, %v301_v8  ;;  %v303_v20 = vld [vmem:[%s984_s29 + $0x1a8] sm:$0xff] }
  0x59   : > { %v351_v16 = vld [vmem:[%s990_s28 + $0x18] sm:$0xff]  ;;  %v254_v19 = vld [vmem:[%s984_s29 + $0x20] sm:$0xff]  ;;  %v255_v26 = vld [vmem:[%s984_s29 + $0x28] sm:$0xff] }
  0x5a   : > { %v352_v21 = vld [vmem:[%s990_s28 + $0x20] sm:$0xff]  ;;  %v400_v22 = vmul.f32 %v351_v16, %v253_v14  ;;  %v449_v23 = vmul.f32 %v351_v16, %v302_v15  ;;  %v495_v24 = vadd.f32 %v398_v11, %v397_v10  ;;  %v549_v25 = vadd.f32 %v447_v13, %v446_v12  ;;  %v304_v27 = vld [vmem:[%s984_s29 + $0x1b0] sm:$0xff]  ;;  %v353_v28 = vld [vmem:[%s990_s28 + $0x28] sm:$0xff] }
  0x5b   : > { %v401_v29 = vmul.f32 %v352_v21, %v254_v19  ;;  %v450_v30 = vmul.f32 %v352_v21, %v303_v20  ;;  %v256_v33 = vld [vmem:[%s984_s29 + $0x30] sm:$0xff]  ;;  %v305_v34 = vld [vmem:[%s984_s29 + $0x1b8] sm:$0xff]  ;;  %v402_v36 = vmul.f32 %v353_v28, %v255_v26  ;;  %v451_v37 = vmul.f32 %v353_v28, %v304_v27  ;;  %v306_v41 = vld [vmem:[%s984_s29 + $0x1c0] sm:$0xff] }
  0x5c   : > { %v496_v31 = vadd.f32 %v495_v24, %v399_v17  ;;  %v550_v32 = vadd.f32 %v549_v25, %v448_v18  ;;  %v354_v35 = vld [vmem:[%s990_s28 + $0x30] sm:$0xff]  ;;  %v257_v40 = vld [vmem:[%s984_s29 + $0x38] sm:$0xff]  ;;  %v258_v47 = vld [vmem:[%s984_s29 + $0x40] sm:$0xff] }
  0x5d   : > { %v355_v42 = vld [vmem:[%s990_s28 + $0x38] sm:$0xff]  ;;  %v403_v43 = vmul.f32 %v354_v35, %v256_v33  ;;  %v452_v44 = vmul.f32 %v354_v35, %v305_v34  ;;  %v307_v48 = vld [vmem:[%s984_s29 + $0x1c8] sm:$0xff]  ;;  %v356_v49 = vld [vmem:[%s990_s28 + $0x40] sm:$0xff] }
  0x5e   : > { %v497_v38 = vadd.f32 %v496_v31, %v400_v22  ;;  %v551_v39 = vadd.f32 %v550_v32, %v449_v23  ;;  %v404_v50 = vmul.f32 %v355_v42, %v257_v40  ;;  %v453_v51 = vmul.f32 %v355_v42, %v306_v41  ;;  %v259_v54 = vld [vmem:[%s984_s29 + $0x48] sm:$0xff]  ;;  %v308_v55 = vld [vmem:[%s984_s29 + $0x1d0] sm:$0xff]  ;;  %v309_v62 = vld [vmem:[%s984_s29 + $0x1d8] sm:$0xff] }
  0x5f   : > { %v357_v56 = vld [vmem:[%s990_s28 + $0x48] sm:$0xff]  ;;  %v405_v57 = vmul.f32 %v356_v49, %v258_v47  ;;  %v454_v58 = vmul.f32 %v356_v49, %v307_v48  ;;  %v260_v61 = vld [vmem:[%s984_s29 + $0x50] sm:$0xff]  ;;  %v261_v4 = vld [vmem:[%s984_s29 + $0x58] sm:$0xff] }
  0x60   : > { %v498_v45 = vadd.f32 %v497_v38, %v401_v29  ;;  %v552_v46 = vadd.f32 %v551_v39, %v450_v30  ;;  %v358_v63 = vld [vmem:[%s990_s28 + $0x50] sm:$0xff]  ;;  %v406_v0 = vmul.f32 %v357_v56, %v259_v54  ;;  %v455_v1 = vmul.f32 %v357_v56, %v308_v55  ;;  %v310_v5 = vld [vmem:[%s984_s29 + $0x1e0] sm:$0xff]  ;;  %v359_v6 = vld [vmem:[%s990_s28 + $0x58] sm:$0xff] }
  0x61   : > { %v407_v7 = vmul.f32 %v358_v63, %v260_v61  ;;  %v456_v8 = vmul.f32 %v358_v63, %v309_v62  ;;  %v262_v11 = vld [vmem:[%s984_s29 + $0x60] sm:$0xff]  ;;  %v311_v12 = vld [vmem:[%s984_s29 + $0x1e8] sm:$0xff]  ;;  %v408_v14 = vmul.f32 %v359_v6, %v261_v4  ;;  %v457_v15 = vmul.f32 %v359_v6, %v310_v5  ;;  %v312_v19 = vld [vmem:[%s984_s29 + $0x1f0] sm:$0xff] }
  0x62   : > { %v499_v52 = vadd.f32 %v498_v45, %v402_v36  ;;  %v553_v53 = vadd.f32 %v552_v46, %v451_v37  ;;  %v360_v13 = vld [vmem:[%s990_s28 + $0x60] sm:$0xff]  ;;  %v263_v18 = vld [vmem:[%s984_s29 + $0x68] sm:$0xff]  ;;  %v264_v25 = vld [vmem:[%s984_s29 + $0x70] sm:$0xff] }
  0x63   : > { %v361_v20 = vld [vmem:[%s990_s28 + $0x68] sm:$0xff]  ;;  %v409_v21 = vmul.f32 %v360_v13, %v262_v11  ;;  %v458_v22 = vmul.f32 %v360_v13, %v311_v12  ;;  %v313_v26 = vld [vmem:[%s984_s29 + $0x1f8] sm:$0xff]  ;;  %v362_v27 = vld [vmem:[%s990_s28 + $0x70] sm:$0xff] }
  0x64   : > { %v500_v59 = vadd.f32 %v499_v52, %v403_v43  ;;  %v554_v60 = vadd.f32 %v553_v53, %v452_v44  ;;  %v410_v28 = vmul.f32 %v361_v20, %v263_v18  ;;  %v459_v29 = vmul.f32 %v361_v20, %v312_v19  ;;  %v265_v32 = vld [vmem:[%s984_s29 + $0x78] sm:$0xff]  ;;  %v314_v33 = vld [vmem:[%s984_s29 + $0x200] sm:$0xff]  ;;  %v315_v40 = vld [vmem:[%s984_s29 + $0x208] sm:$0xff] }
  0x65   : > { %v363_v34 = vld [vmem:[%s990_s28 + $0x78] sm:$0xff]  ;;  %v411_v35 = vmul.f32 %v362_v27, %v264_v25  ;;  %v460_v36 = vmul.f32 %v362_v27, %v313_v26  ;;  %v266_v39 = vld [vmem:[%s984_s29 + $0x80] sm:$0xff]  ;;  %v267_v46 = vld [vmem:[%s984_s29 + $0x88] sm:$0xff] }
  0x66   : > { %v501_v2 = vadd.f32 %v500_v59, %v404_v50  ;;  %v555_v3 = vadd.f32 %v554_v60, %v453_v51  ;;  %v364_v41 = vld [vmem:[%s990_s28 + $0x80] sm:$0xff]  ;;  %v412_v42 = vmul.f32 %v363_v34, %v265_v32  ;;  %v461_v43 = vmul.f32 %v363_v34, %v314_v33  ;;  %v316_v47 = vld [vmem:[%s984_s29 + $0x210] sm:$0xff]  ;;  %v365_v48 = vld [vmem:[%s990_s28 + $0x88] sm:$0xff] }
  0x67   : > { %v413_v49 = vmul.f32 %v364_v41, %v266_v39  ;;  %v462_v50 = vmul.f32 %v364_v41, %v315_v40  ;;  %v268_v53 = vld [vmem:[%s984_s29 + $0x90] sm:$0xff]  ;;  %v317_v54 = vld [vmem:[%s984_s29 + $0x218] sm:$0xff]  ;;  %v414_v56 = vmul.f32 %v365_v48, %v267_v46  ;;  %v318_v61 = vld [vmem:[%s984_s29 + $0x220] sm:$0xff] }
  0x68   : > { %v502_v9 = vadd.f32 %v501_v2, %v405_v57  ;;  %v556_v10 = vadd.f32 %v555_v3, %v454_v58  ;;  %v366_v55 = vld [vmem:[%s990_s28 + $0x90] sm:$0xff]  ;;  %v463_v57 = vmul.f32 %v365_v48, %v316_v47  ;;  %v269_v60 = vld [vmem:[%s984_s29 + $0x98] sm:$0xff]  ;;  %v270_v3 = vld [vmem:[%s984_s29 + $0xa0] sm:$0xff] }
  0x69   : > { %v367_v62 = vld [vmem:[%s990_s28 + $0x98] sm:$0xff]  ;;  %v415_v63 = vmul.f32 %v366_v55, %v268_v53  ;;  %v319_v4 = vld [vmem:[%s984_s29 + $0x228] sm:$0xff]  ;;  %v368_v5 = vld [vmem:[%s990_s28 + $0xa0] sm:$0xff] }
  0x6a   : > { %v503_v16 = vadd.f32 %v502_v9, %v406_v0  ;;  %v557_v17 = vadd.f32 %v556_v10, %v455_v1  ;;  %v464_v0 = vmul.f32 %v366_v55, %v317_v54  ;;  %v416_v6 = vmul.f32 %v367_v62, %v269_v60  ;;  %v271_v10 = vld [vmem:[%s984_s29 + $0xa8] sm:$0xff]  ;;  %v320_v11 = vld [vmem:[%s984_s29 + $0x230] sm:$0xff]  ;;  %v321_v18 = vld [vmem:[%s984_s29 + $0x238] sm:$0xff] }
  0x6b   : > { %v369_v12 = vld [vmem:[%s990_s28 + $0xa8] sm:$0xff]  ;;  %v417_v13 = vmul.f32 %v368_v5, %v270_v3  ;;  %v370_v19 = vld [vmem:[%s990_s28 + $0xb0] sm:$0xff]  ;;  %v371_v26 = vld [vmem:[%s990_s28 + $0xb8] sm:$0xff] }
  0x6c   : > { %v504_v23 = vadd.f32 %v503_v16, %v407_v7  ;;  %v558_v24 = vadd.f32 %v557_v17, %v456_v8  ;;  %v465_v7 = vmul.f32 %v367_v62, %v318_v61  ;;  %v272_v17 = vld [vmem:[%s984_s29 + $0xb0] sm:$0xff]  ;;  %v418_v20 = vmul.f32 %v369_v12, %v271_v10  ;;  %v322_v25 = vld [vmem:[%s984_s29 + $0x240] sm:$0xff]  ;;  %v323_v32 = vld [vmem:[%s984_s29 + $0x248] sm:$0xff] }
  0x6d   : > { %v419_v27 = vmul.f32 %v370_v19, %v272_v17  ;;  %v372_v33 = vld [vmem:[%s990_s28 + $0xc0] sm:$0xff]  ;;  %v324_v39 = vld [vmem:[%s984_s29 + $0x250] sm:$0xff]  ;;  %v373_v40 = vld [vmem:[%s990_s28 + $0xc8] sm:$0xff] }
  0x6e   : > { %v505_v30 = vadd.f32 %v504_v23, %v408_v14  ;;  %v559_v31 = vadd.f32 %v558_v24, %v457_v15  ;;  %v466_v14 = vmul.f32 %v368_v5, %v319_v4  ;;  %v273_v24 = vld [vmem:[%s984_s29 + $0xb8] sm:$0xff]  ;;  %v374_v47 = vld [vmem:[%s990_s28 + $0xd0] sm:$0xff]  ;;  %v326_v53 = vld [vmem:[%s984_s29 + $0x260] sm:$0xff] }
  0x6f   : > { %v420_v34 = vmul.f32 %v371_v26, %v273_v24  ;;  %v325_v46 = vld [vmem:[%s984_s29 + $0x258] sm:$0xff]  ;;  %v327_v60 = vld [vmem:[%s984_s29 + $0x268] sm:$0xff]  ;;  %v328_v3 = vld [vmem:[%s984_s29 + $0x270] sm:$0xff] }
  0x70   : > { %v506_v37 = vadd.f32 %v505_v30, %v409_v21  ;;  %v560_v38 = vadd.f32 %v559_v31, %v458_v22  ;;  %v467_v21 = vmul.f32 %v369_v12, %v320_v11  ;;  %v274_v31 = vld [vmem:[%s984_s29 + $0xc0] sm:$0xff]  ;;  %v375_v54 = vld [vmem:[%s990_s28 + $0xd8] sm:$0xff]  ;;  %v378_v11 = vld [vmem:[%s990_s28 + $0xf0] sm:$0xff] }
  0x71   : > { %v421_v41 = vmul.f32 %v372_v33, %v274_v31  ;;  %v376_v61 = vld [vmem:[%s990_s28 + $0xe0] sm:$0xff]  ;;  %v377_v4 = vld [vmem:[%s990_s28 + $0xe8] sm:$0xff]  ;;  %v332_v31 = vld [vmem:[%s984_s29 + $0x290] sm:$0xff] }
  0x72   : > { %v507_v44 = vadd.f32 %v506_v37, %v410_v28  ;;  %v561_v45 = vadd.f32 %v560_v38, %v459_v29  ;;  %v468_v28 = vmul.f32 %v370_v19, %v321_v18  ;;  %v275_v38 = vld [vmem:[%s984_s29 + $0xc8] sm:$0xff]  ;;  %v329_v10 = vld [vmem:[%s984_s29 + $0x278] sm:$0xff]  ;;  %v330_v17 = vld [vmem:[%s984_s29 + $0x280] sm:$0xff] }
  0x73   : > { %v422_v48 = vmul.f32 %v373_v40, %v275_v38  ;;  %v379_v18 = vld [vmem:[%s990_s28 + $0xf8] sm:$0xff]  ;;  %v331_v24 = vld [vmem:[%s984_s29 + $0x288] sm:$0xff] }
  0x74   : > { %v508_v51 = vadd.f32 %v507_v44, %v411_v35  ;;  %v562_v52 = vadd.f32 %v561_v45, %v460_v36  ;;  %v469_v35 = vmul.f32 %v371_v26, %v322_v25  ;;  %v276_v45 = vld [vmem:[%s984_s29 + $0xd0] sm:$0xff]  ;;  %v380_v25 = vld [vmem:[%s990_s28 + $0x100] sm:$0xff] }
  0x75   : > { %v423_v55 = vmul.f32 %v374_v47, %v276_v45  ;;  %v333_v38 = vld [vmem:[%s984_s29 + $0x298] sm:$0xff]  ;;  %v334_v45 = vld [vmem:[%s984_s29 + $0x2a0] sm:$0xff] }
  0x76   : > { %v509_v58 = vadd.f32 %v508_v51, %v412_v42  ;;  %v563_v59 = vadd.f32 %v562_v52, %v461_v43  ;;  %v470_v42 = vmul.f32 %v372_v33, %v323_v32  ;;  %v277_v52 = vld [vmem:[%s984_s29 + $0xd8] sm:$0xff]  ;;  %v381_v32 = vld [vmem:[%s990_s28 + $0x108] sm:$0xff] }
  0x77   : > { %v424_v62 = vmul.f32 %v375_v54, %v277_v52  ;;  %v335_v52 = vld [vmem:[%s984_s29 + $0x2a8] sm:$0xff] }
  0x78   : > { %v510_v1 = vadd.f32 %v509_v58, %v413_v49  ;;  %v564_v2 = vadd.f32 %v563_v59, %v462_v50  ;;  %v471_v49 = vmul.f32 %v373_v40, %v324_v39  ;;  %v278_v59 = vld [vmem:[%s984_s29 + $0xe0] sm:$0xff]  ;;  %v382_v39 = vld [vmem:[%s990_s28 + $0x110] sm:$0xff] }
  0x79   : > { %v425_v5 = vmul.f32 %v376_v61, %v278_v59  ;;  %v336_v59 = vld [vmem:[%s984_s29 + $0x2b0] sm:$0xff] }
  0x7a   : > { %v511_v8 = vadd.f32 %v510_v1, %v414_v56  ;;  %v565_v9 = vadd.f32 %v564_v2, %v463_v57  ;;  %v472_v56 = vmul.f32 %v374_v47, %v325_v46  ;;  %v279_v2 = vld [vmem:[%s984_s29 + $0xe8] sm:$0xff]  ;;  %v383_v46 = vld [vmem:[%s990_s28 + $0x118] sm:$0xff] }
  0x7b   : > { %v426_v12 = vmul.f32 %v377_v4, %v279_v2  ;;  %v337_v2 = vld [vmem:[%s984_s29 + $0x2b8] sm:$0xff] }
  0x7c   : > { %v512_v15 = vadd.f32 %v511_v8, %v415_v63  ;;  %v566_v16 = vadd.f32 %v565_v9, %v464_v0  ;;  %v473_v63 = vmul.f32 %v375_v54, %v326_v53  ;;  %v280_v9 = vld [vmem:[%s984_s29 + $0xf0] sm:$0xff]  ;;  %v384_v53 = vld [vmem:[%s990_s28 + $0x120] sm:$0xff] }
  0x7d   : > { %v427_v19 = vmul.f32 %v378_v11, %v280_v9  ;;  %v338_v9 = vld [vmem:[%s984_s29 + $0x2c0] sm:$0xff] }
  0x7e   : > { %v513_v22 = vadd.f32 %v512_v15, %v416_v6  ;;  %v567_v23 = vadd.f32 %v566_v16, %v465_v7  ;;  %v474_v6 = vmul.f32 %v376_v61, %v327_v60  ;;  %v281_v16 = vld [vmem:[%s984_s29 + $0xf8] sm:$0xff]  ;;  %v385_v60 = vld [vmem:[%s990_s28 + $0x128] sm:$0xff] }
  0x7f   : > { %v428_v26 = vmul.f32 %v379_v18, %v281_v16  ;;  %v339_v16 = vld [vmem:[%s984_s29 + $0x2c8] sm:$0xff] }
  0x80   : > { %v514_v29 = vadd.f32 %v513_v22, %v417_v13  ;;  %v568_v30 = vadd.f32 %v567_v23, %v466_v14  ;;  %v475_v13 = vmul.f32 %v377_v4, %v328_v3  ;;  %v282_v23 = vld [vmem:[%s984_s29 + $0x100] sm:$0xff]  ;;  %v386_v3 = vld [vmem:[%s990_s28 + $0x130] sm:$0xff] }
  0x81   : > { %v429_v33 = vmul.f32 %v380_v25, %v282_v23  ;;  %v340_v23 = vld [vmem:[%s984_s29 + $0x2d0] sm:$0xff] }
  0x82   : > { %v515_v36 = vadd.f32 %v514_v29, %v418_v20  ;;  %v569_v37 = vadd.f32 %v568_v30, %v467_v21  ;;  %v476_v20 = vmul.f32 %v378_v11, %v329_v10  ;;  %v283_v30 = vld [vmem:[%s984_s29 + $0x108] sm:$0xff]  ;;  %v387_v10 = vld [vmem:[%s990_s28 + $0x138] sm:$0xff] }
  0x83   : > { %v430_v40 = vmul.f32 %v381_v32, %v283_v30  ;;  %v341_v30 = vld [vmem:[%s984_s29 + $0x2d8] sm:$0xff] }
  0x84   : > { %v516_v43 = vadd.f32 %v515_v36, %v419_v27  ;;  %v570_v44 = vadd.f32 %v569_v37, %v468_v28  ;;  %v477_v27 = vmul.f32 %v379_v18, %v330_v17  ;;  %v284_v37 = vld [vmem:[%s984_s29 + $0x110] sm:$0xff]  ;;  %v388_v17 = vld [vmem:[%s990_s28 + $0x140] sm:$0xff] }
  0x85   : > { %v431_v47 = vmul.f32 %v382_v39, %v284_v37  ;;  %v342_v37 = vld [vmem:[%s984_s29 + $0x2e0] sm:$0xff] }
  0x86   : > { %v517_v50 = vadd.f32 %v516_v43, %v420_v34  ;;  %v571_v51 = vadd.f32 %v570_v44, %v469_v35  ;;  %v478_v34 = vmul.f32 %v380_v25, %v331_v24  ;;  %v285_v44 = vld [vmem:[%s984_s29 + $0x118] sm:$0xff]  ;;  %v389_v24 = vld [vmem:[%s990_s28 + $0x148] sm:$0xff] }
  0x87   : > { %v432_v54 = vmul.f32 %v383_v46, %v285_v44  ;;  %v343_v44 = vld [vmem:[%s984_s29 + $0x2e8] sm:$0xff] }
  0x88   : > { %v518_v57 = vadd.f32 %v517_v50, %v421_v41  ;;  %v572_v58 = vadd.f32 %v571_v51, %v470_v42  ;;  %v479_v41 = vmul.f32 %v381_v32, %v332_v31  ;;  %v286_v51 = vld [vmem:[%s984_s29 + $0x120] sm:$0xff]  ;;  %v390_v31 = vld [vmem:[%s990_s28 + $0x150] sm:$0xff] }
  0x89   : > { %v433_v61 = vmul.f32 %v384_v53, %v286_v51  ;;  %v344_v51 = vld [vmem:[%s984_s29 + $0x2f0] sm:$0xff] }
  0x8a   : > { %v519_v0 = vadd.f32 %v518_v57, %v422_v48  ;;  %v573_v1 = vadd.f32 %v572_v58, %v471_v49  ;;  %v480_v48 = vmul.f32 %v382_v39, %v333_v38  ;;  %v287_v58 = vld [vmem:[%s984_s29 + $0x128] sm:$0xff]  ;;  %v391_v38 = vld [vmem:[%s990_s28 + $0x158] sm:$0xff] }
  0x8b   : > { %v434_v4 = vmul.f32 %v385_v60, %v287_v58  ;;  %v345_v58 = vld [vmem:[%s984_s29 + $0x2f8] sm:$0xff] }
  0x8c   : > { %v520_v7 = vadd.f32 %v519_v0, %v423_v55  ;;  %v574_v8 = vadd.f32 %v573_v1, %v472_v56  ;;  %v481_v55 = vmul.f32 %v383_v46, %v334_v45  ;;  %v288_v1 = vld [vmem:[%s984_s29 + $0x130] sm:$0xff]  ;;  %v392_v45 = vld [vmem:[%s990_s28 + $0x160] sm:$0xff] }
  0x8d   : > { %v435_v11 = vmul.f32 %v386_v3, %v288_v1  ;;  %v346_v1 = vld [vmem:[%s984_s29 + $0x300] sm:$0xff] }
  0x8e   : > { %v521_v14 = vadd.f32 %v520_v7, %v424_v62  ;;  %v575_v15 = vadd.f32 %v574_v8, %v473_v63  ;;  %v482_v62 = vmul.f32 %v384_v53, %v335_v52  ;;  %v289_v8 = vld [vmem:[%s984_s29 + $0x138] sm:$0xff]  ;;  %v393_v52 = vld [vmem:[%s990_s28 + $0x168] sm:$0xff] }
  0x8f   : > { %v436_v18 = vmul.f32 %v387_v10, %v289_v8  ;;  %v347_v8 = vld [vmem:[%s984_s29 + $0x308] sm:$0xff] }
  0x90   : > { %v522_v21 = vadd.f32 %v521_v14, %v425_v5  ;;  %v576_v22 = vadd.f32 %v575_v15, %v474_v6  ;;  %v483_v5 = vmul.f32 %v385_v60, %v336_v59  ;;  %v290_v15 = vld [vmem:[%s984_s29 + $0x140] sm:$0xff]  ;;  %v394_v59 = vld [vmem:[%s990_s28 + $0x170] sm:$0xff] }
  0x91   : > { %v437_v25 = vmul.f32 %v388_v17, %v290_v15 }
  0x92   : > { %v523_v28 = vadd.f32 %v522_v21, %v426_v12  ;;  %v577_v29 = vadd.f32 %v576_v22, %v475_v13  ;;  %v484_v12 = vmul.f32 %v386_v3, %v337_v2  ;;  %v291_v22 = vld [vmem:[%s984_s29 + $0x148] sm:$0xff]  ;;  %v395_v2 = vld [vmem:[%s990_s28 + $0x178] sm:$0xff] }
  0x93   : > { %v438_v32 = vmul.f32 %v389_v24, %v291_v22 }
  0x94   : > { %v524_v35 = vadd.f32 %v523_v28, %v427_v19  ;;  %v578_v36 = vadd.f32 %v577_v29, %v476_v20  ;;  %v485_v19 = vmul.f32 %v387_v10, %v338_v9  ;;  %v292_v29 = vld [vmem:[%s984_s29 + $0x150] sm:$0xff]  ;;  %v396_v9 = vld [vmem:[%s990_s28 + $0x180] sm:$0xff] }
  0x95   : > { %v439_v39 = vmul.f32 %v390_v31, %v292_v29  ;;  %v494_v15 = vmul.f32 %v396_v9, %v347_v8 }
  0x96   : > { %v525_v42 = vadd.f32 %v524_v35, %v428_v26  ;;  %v579_v43 = vadd.f32 %v578_v36, %v477_v27  ;;  %v486_v26 = vmul.f32 %v388_v17, %v339_v16  ;;  %v293_v36 = vld [vmem:[%s984_s29 + $0x158] sm:$0xff] }
  0x97   : > { %v440_v46 = vmul.f32 %v391_v38, %v293_v36 }
  0x98   : > { %v526_v49 = vadd.f32 %v525_v42, %v429_v33  ;;  %v580_v50 = vadd.f32 %v579_v43, %v478_v34  ;;  %v487_v33 = vmul.f32 %v389_v24, %v340_v23  ;;  %v294_v43 = vld [vmem:[%s984_s29 + $0x160] sm:$0xff] }
  0x99   : > { %v441_v53 = vmul.f32 %v392_v45, %v294_v43 }
  0x9a   : > { %v527_v56 = vadd.f32 %v526_v49, %v430_v40  ;;  %v581_v57 = vadd.f32 %v580_v50, %v479_v41  ;;  %v488_v40 = vmul.f32 %v390_v31, %v341_v30  ;;  %v295_v50 = vld [vmem:[%s984_s29 + $0x168] sm:$0xff] }
  0x9b   : > { %v442_v60 = vmul.f32 %v393_v52, %v295_v50 }
  0x9c   : > { %v528_v63 = vadd.f32 %v527_v56, %v431_v47  ;;  %v582_v0 = vadd.f32 %v581_v57, %v480_v48  ;;  %v489_v47 = vmul.f32 %v391_v38, %v342_v37  ;;  %v296_v57 = vld [vmem:[%s984_s29 + $0x170] sm:$0xff] }
  0x9d   : > { %v443_v3 = vmul.f32 %v394_v59, %v296_v57 }
  0x9e   : > { %v529_v6 = vadd.f32 %v528_v63, %v432_v54  ;;  %v583_v7 = vadd.f32 %v582_v0, %v481_v55  ;;  %v490_v54 = vmul.f32 %v392_v45, %v343_v44  ;;  %v297_v0 = vld [vmem:[%s984_s29 + $0x178] sm:$0xff] }
  0x9f   : > { %v444_v10 = vmul.f32 %v395_v2, %v297_v0 }
  0xa0   : > { %v530_v13 = vadd.f32 %v529_v6, %v433_v61  ;;  %v584_v14 = vadd.f32 %v583_v7, %v482_v62  ;;  %v491_v61 = vmul.f32 %v393_v52, %v344_v51  ;;  %v298_v7 = vld [vmem:[%s984_s29 + $0x180] sm:$0xff] }
  0xa2   : > { %v531_v20 = vadd.f32 %v530_v13, %v434_v4  ;;  %v585_v21 = vadd.f32 %v584_v14, %v483_v5  ;;  %v492_v4 = vmul.f32 %v394_v59, %v345_v58  ;;  %v445_v14 = vmul.f32 %v396_v9, %v298_v7 }
  0xa4   : > { %v532_v27 = vadd.f32 %v531_v20, %v435_v11  ;;  %v586_v28 = vadd.f32 %v585_v21, %v484_v12  ;;  %v493_v11 = vmul.f32 %v395_v2, %v346_v1 }
  0xa6   : > { %v533_v34 = vadd.f32 %v532_v27, %v436_v18  ;;  %v587_v35 = vadd.f32 %v586_v28, %v485_v19 }
  0xa8   : > { %v534_v41 = vadd.f32 %v533_v34, %v437_v25  ;;  %v588_v42 = vadd.f32 %v587_v35, %v486_v26 }
  0xaa   : > { %v535_v48 = vadd.f32 %v534_v41, %v438_v32  ;;  %v589_v49 = vadd.f32 %v588_v42, %v487_v33  ;;  %v249_v32 = vld [vmem:[#allocation2] sm:$0x3] }
  0xac   : > { %v536_v55 = vadd.f32 %v535_v48, %v439_v39  ;;  %v590_v56 = vadd.f32 %v589_v49, %v488_v40  ;;  %v620_v39 = vstv (!%p714_p6), %s619_s17 }
  0xae   : > { %v537_v62 = vadd.f32 %v536_v55, %v440_v46  ;;  %v591_v63 = vadd.f32 %v590_v56, %v489_v47 }
  0xb0   : > { %v538_v5 = vadd.f32 %v537_v62, %v441_v53  ;;  %v592_v6 = vadd.f32 %v591_v63, %v490_v54 }
  0xb2   : > { %v539_v12 = vadd.f32 %v538_v5, %v442_v60  ;;  %v593_v13 = vadd.f32 %v592_v6, %v491_v61 }
  0xb4   : > { %v540_v16 = vadd.f32 %v539_v12, %v443_v3  ;;  %v594_v17 = vadd.f32 %v593_v13, %v492_v4 }
  0xb6   : > { %v541_v18 = vadd.f32 %v540_v16, %v444_v10  ;;  %v595_v19 = vadd.f32 %v594_v17, %v493_v11 }
  0xb8   : > { %v542_v20 = vadd.f32 %v541_v18, %v445_v14  ;;  %v596_v21 = vadd.f32 %v595_v19, %v494_v15 }
  0xba   : > { %v543_v22 = vrot.slane %v542_v20, 4  ;;  %v597_v23 = vrot.slane %v596_v21, 4 }
  0xbc   : > { %v544_v24 = vadd.f32 %v543_v22, %v542_v20  ;;  %v598_v25 = vadd.f32 %v597_v23, %v596_v21 }
  0xbe   : > { %v545_v26 = vrot.slane %v544_v24, 2  ;;  %v599_v27 = vrot.slane %v598_v25, 2 }
  0xc0   : > { %v546_v28 = vadd.f32 %v545_v26, %v544_v24  ;;  %v600_v29 = vadd.f32 %v599_v27, %v598_v25 }
  0xc2   : > { %v547_v30 = vrot.slane %v546_v28, 1  ;;  %v601_v31 = vrot.slane %v600_v29, 1 }
  0xc3   : > { %613 = sbr.rel (%p714_p6) target bundleno = 409 (0x199), region = 48 }
  0xc4   : > { %v548_v33 = vadd.f32 %v547_v30, %v546_v28  ;;  %v602_v34 = vadd.f32 %v601_v31, %v600_v29 }
  0xc6   : > { %v606_v35 = vsel %vm605_vm0, %v602_v34, %v548_v33 }
  0xc7   : > { %v608_v36 = vadd.f32 %v606_v35, %v249_v32 }
  0xc9   : > { %609 = vst [vmem:[#allocation2] sm:$0x3] %v608_v36 }
  0xd0   : > { %v614_v37 = vld [vmem:[#allocation2] sm:$0x3] }
  0xd1   : > { %v616_v38 = vsel %vm615_vm1, %v614_v37, 0.0 }
  0xd2   : > { %617 = vadd.xlane.f32.xlu0 %v616_v38 }
 0x15f   : > { %v618_v40 = vpop.xlane.xlu0 %617 }
 0x160   : > { %v621_v41 = vadd.f32 %v620_v39, %v618_v40 }
 0x162   : > { %v622_v42 = vsel %vm615_vm1, %v621_v41, -inf }
 0x163   : > { %v623_v43 = vrot.slane %v622_v42, 4 }
 0x165   : > { %v624_v44 = vmax.f32 %v622_v42, %v623_v43 }
 0x167   : > { %v625_v45 = vrot.slane %v624_v44, 2 }
 0x169   : > { %v626_v46 = vmax.f32 %v624_v44, %v625_v45 }
 0x16b   : > { %v627_v47 = vrot.slane %v626_v46, 1 }
 0x16d   : > { %v628_v48 = vmax.f32 %v626_v46, %v627_v47 }
 0x16f   : > { %v629_v49 = vsub.f32 %v621_v41, %v628_v48 }
 0x171   : > { %v630_v50 = vmul.f32 1.442695, %v629_v49 }
 0x173   : > { %775 = vpow2.f32 %v630_v50 }
 0x17d   : > { %v776_v51 = vpop.eup %775 }
 0x17e   : > { %v632_v52 = vsel %vm615_vm1, %v776_v51, 0.0 }
 0x17f   : > { %v633_v53 = vrot.slane %v632_v52, 4 }
 0x181   : > { %v634_v54 = vadd.f32 %v633_v53, %v632_v52 }
 0x183   : > { %v635_v55 = vrot.slane %v634_v54, 2 }
 0x185   : > { %v636_v56 = vadd.f32 %v635_v55, %v634_v54 }
 0x187   : > { %v637_v57 = vrot.slane %v636_v56, 1 }
 0x189   : > { %v638_v58 = vadd.f32 %v637_v57, %v636_v56 }
 0x18b   : > { %777 = vrcp.f32 %v638_v58 }
 0x195   : > { %v778_v59 = vpop.eup %777 }
 0x196   : > { %v640_v60 = vmul.f32 %v778_v59, %v776_v51 }
 0x198   : > { %642 = vst.msk [vmem:[%s1167_s3] sm:$0x3] %vm641_vm2, %v640_v60 }
 0x199 PF: > { %p17_p1 = scmp.ge.s32.totalorder %s902_s18, 5   ;;  %s1170_s14 = smov %s837_s15 }
 0x19a   : > { %s1171_s15 = smov %s841_s16  ;;  %s1172_s16 = smov %s912_s21 }
 0x19b   : > { %s1173_s17 = smov %s902_s18  ;;  %19 = sbr.rel (!%p17_p1) target bundleno = 7 (0x7), region = 94 }
 0x1a2   :  { %654 = vsyncpa [#allocation5], 1 }
 0x1a3   :  { %656 = vsyncpa [#allocation5 + $0x1], 1 }
 0x1a4   :  { %657 = vsyncpa [#allocation7], 1 }
 0x1a5   :  { %659 = vsyncpa [#allocation7 + $0x1], 1 }

</bundles_post_ra>
